<compile_context>
chip_gen: v6e
topology: v6e:2x2x1
jax: 0.10.0
libtpu: 0.0.40
codegen_flags: <defaults>
</compile_context>

<pallas_src>
import functools

import jax
import jax.numpy as jnp
from jax.experimental import pallas as pl
from jax.experimental.pallas import tpu as pltpu


# ---------------------------------------------------------------------------
# Kernels
# ---------------------------------------------------------------------------

def _se_scale(pooled, w1_ref, b1_ref, w2t_ref, b2_ref):
    """Squeeze/excite on a pooled (Nb, C) block -> sigmoid scale (Nb, C) f32."""
    # 1x1 conv C -> C//16 as VPU broadcast-multiply + lane reduce.
    z = jnp.sum(pooled[:, None, :] * w1_ref[...][None, :, :], axis=-1) + b1_ref[...]
    z = jnp.where(z >= 0, z, 0.1 * z)                          # LeakyReLU(0.1)
    # 1x1 conv C//16 -> C, lane-dense in C.
    y = jnp.sum(z[:, :, None] * w2t_ref[...][None, :, :], axis=1) + b2_ref[...]
    return jax.nn.sigmoid(y)                                   # (Nb, C)


def _ca_kernel_full(x_ref, w1_ref, b1_ref, w2t_ref, b2_ref, o_ref, *, inv_hw):
    """Whole image(s) per block: pool, excite, scale in one pass."""
    pooled = jnp.sum(x_ref[...].astype(jnp.float32), axis=-1) * inv_hw    # (Nb, C)
    y = _se_scale(pooled, w1_ref, b1_ref, w2t_ref, b2_ref)                # (Nb, C)
    o_ref[...] = (x_ref[...].astype(jnp.float32) * y[:, :, None]).astype(o_ref.dtype)


def _ca_kernel_tiled(x_ref, w1_ref, b1_ref, w2t_ref, b2_ref, o_ref,
                     pool_sc, y_sc, *, inv_hw):
    """Spatially tiled fallback: grid = (N, 2 phases, HW tiles).

    Phase 0 accumulates the pooled sum over all HW tiles into VMEM scratch
    (no output writeback: the out index is pinned during phase 0); phase 1
    re-streams x and applies the sigmoid scale tile by tile.
    """
    phase = pl.program_id(1)
    t = pl.program_id(2)

    @pl.when((phase == 0) & (t == 0))
    def _():
        pool_sc[...] = jnp.zeros_like(pool_sc)

    @pl.when(phase == 0)
    def _():
        pool_sc[...] += jnp.sum(x_ref[...].astype(jnp.float32), axis=-1)

    @pl.when((phase == 1) & (t == 0))
    def _():
        y_sc[...] = _se_scale(pool_sc[...] * inv_hw,
                              w1_ref, b1_ref, w2t_ref, b2_ref)

    @pl.when(phase == 1)
    def _():
        o_ref[...] = (x_ref[...].astype(jnp.float32)
                      * y_sc[...][:, :, None]).astype(o_ref.dtype)


# ---------------------------------------------------------------------------
# Wrapper
# ---------------------------------------------------------------------------

def _chip_config():
    """Per-generation block-size / pipelining targets (best-effort sniffing)."""
    kind = ""
    try:
        kind = jax.devices()[0].device_kind.lower()
    except Exception:
        pass
    if "v7" in kind or "7x" in kind:
        # v7x: 2 TensorCores per chip, only 64 MiB physical VMEM.
        return dict(target_block_bytes=4 << 20, min_grid_steps=6,
                    vmem_cap_bytes=48 << 20)
    # v5e / v6e: single TensorCore, 128 MiB physical VMEM.
    return dict(target_block_bytes=8 << 20, min_grid_steps=3,
                vmem_cap_bytes=100 << 20)


def _round_up(v, m):
    return (v + m - 1) // m * m


def _pick_block_batches(n, per_batch_bytes, target_block_bytes, min_grid_steps):
    """Largest Nb dividing n with Nb*per_batch_bytes <= target, preferring a
    grid of >= min_grid_steps (DMA overlap / megacore sharding) when n allows."""
    def pick(require_steps):
        best = None
        for nb in range(1, n + 1):
            if n % nb:
                continue
            if nb * per_batch_bytes > target_block_bytes:
                continue
            if require_steps and n // nb < min_grid_steps:
                continue
            best = nb
        return best

    nb = pick(require_steps=(n >= min_grid_steps))
    if nb is None:
        nb = pick(require_steps=False)
    return nb or 1


def ca_layer(x_nchw, w1, b1, w2, b2, *, block_bytes_override=None):
    """CALayer forward. x_nchw: (N, C, H, W), any float dtype (streamed natively).
    PyTorch-layout params: w1 (C//16, C), b1 (C//16,), w2 (C, C//16), b2 (C,)."""
    N, C, H, W = x_nchw.shape
    HW = H * W
    Cr = w1.shape[0]
    dtype = x_nchw.dtype
    dtype_bytes = jnp.dtype(dtype).itemsize

    cfg = _chip_config()
    target = block_bytes_override or cfg["target_block_bytes"]
    min_steps = cfg["min_grid_steps"]
    vmem_cap = cfg["vmem_cap_bytes"]

    inv_hw = 1.0 / float(HW)   # true spatial size (padding contributes zeros)

    # Tiny squeeze/excite params, lane-dense in C; f32 is fine (negligible bytes).
    w1f = w1.astype(jnp.float32)                    # (Cr, C)
    b1f = b1.reshape(1, Cr).astype(jnp.float32)     # (1, Cr)
    w2t = w2.T.astype(jnp.float32)                  # (Cr, C)
    b2f = b2.reshape(1, C).astype(jnp.float32)      # (1, C)
    weight_bytes = (2 * Cr * C + Cr + C) * 4

    per_image_bytes = C * _round_up(HW, 128) * dtype_bytes

    if per_image_bytes <= target:
        # ---- Path A: one or more whole images per block, single pass. ----
        hw_pad = _round_up(HW, 128)
        x = x_nchw.reshape(N, C, HW)
        if hw_pad != HW:
            x = jnp.pad(x, ((0, 0), (0, 0), (0, hw_pad - HW)))

        nb = _pick_block_batches(N, C * hw_pad * dtype_bytes, target, min_steps)
        block_bytes = nb * C * hw_pad * dtype_bytes
        vmem_limit = min(vmem_cap,
                         max(16 << 20, 4 * block_bytes + 2 * weight_bytes + (2 << 20)))

        out = pl.pallas_call(
            functools.partial(_ca_kernel_full, inv_hw=inv_hw),
            out_shape=jax.ShapeDtypeStruct((N, C, hw_pad), dtype),
            grid_spec=pltpu.PrefetchScalarGridSpec(
                num_scalar_prefetch=0,
                grid=(N // nb,),
                in_specs=[
                    pl.BlockSpec((nb, C, hw_pad), lambda n: (n, 0, 0)),
                    pl.BlockSpec((Cr, C), lambda n: (0, 0)),
                    pl.BlockSpec((1, Cr), lambda n: (0, 0)),
                    pl.BlockSpec((Cr, C), lambda n: (0, 0)),
                    pl.BlockSpec((1, C), lambda n: (0, 0)),
                ],
                out_specs=pl.BlockSpec((nb, C, hw_pad), lambda n: (n, 0, 0)),
            ),
            compiler_params=pltpu.CompilerParams(
                dimension_semantics=("parallel",),
                vmem_limit_bytes=int(vmem_limit)),
        )(x, w1f, b1f, w2t, b2f)
    else:
        # ---- Path B: image exceeds block budget -> tile HW, two phases. ----
        # Largest lane-dense (multiple-of-128) spatial tile within budget.
        thw = max(128, (target // (C * dtype_bytes)) // 128 * 128)
        thw = min(thw, _round_up(HW, 128))
        hw_pad = _round_up(HW, thw)
        n_t = hw_pad // thw

        x = x_nchw.reshape(N, C, HW)
        if hw_pad != HW:
            x = jnp.pad(x, ((0, 0), (0, 0), (0, hw_pad - HW)))

        block_bytes = C * thw * dtype_bytes
        vmem_limit = min(vmem_cap,
                         max(16 << 20, 4 * block_bytes + 2 * weight_bytes + (2 << 20)))

        out = pl.pallas_call(
            functools.partial(_ca_kernel_tiled, inv_hw=inv_hw),
            out_shape=jax.ShapeDtypeStruct((N, C, hw_pad), dtype),
            grid_spec=pltpu.PrefetchScalarGridSpec(
                num_scalar_prefetch=0,
                grid=(N, 2, n_t),
                in_specs=[
                    pl.BlockSpec((1, C, thw), lambda n, p, t: (n, 0, t)),
                    pl.BlockSpec((Cr, C), lambda n, p, t: (0, 0)),
                    pl.BlockSpec((1, Cr), lambda n, p, t: (0, 0)),
                    pl.BlockSpec((Cr, C), lambda n, p, t: (0, 0)),
                    pl.BlockSpec((1, C), lambda n, p, t: (0, 0)),
                ],
                # Pin the output block during phase 0 (p*t == 0) so no garbage
                # writeback happens before phase 1 fills each tile.
                out_specs=pl.BlockSpec((1, C, thw), lambda n, p, t: (n, 0, p * t)),
                scratch_shapes=[pltpu.VMEM((1, C), jnp.float32),   # pooled sum
                                pltpu.VMEM((1, C), jnp.float32)],  # sigmoid scale
            ),
            compiler_params=pltpu.CompilerParams(
                dimension_semantics=("parallel", "arbitrary", "arbitrary"),
                vmem_limit_bytes=int(vmem_limit)),
        )(x, w1f, b1f, w2t, b2f)

    return out[:, :, :HW].reshape(N, C, H, W)


# ---------------------------------------------------------------------------
# Pure-JAX reference (matches the PyTorch forward)
# ---------------------------------------------------------------------------

def _reference(x, w1, b1, w2, b2):
    pooled = jnp.mean(x, axis=(2, 3))                                  # (N, C)
    z = jnp.einsum('rc,nc->nr', w1, pooled) + b1[None, :]              # (N, Cr)
    z = jnp.where(z >= 0, z, 0.1 * z)                                  # LeakyReLU(0.1)
    y = jnp.einsum('cr,nr->nc', w2, z) + b2[None, :]                   # (N, C)
    y = jax.nn.sigmoid(y)
    return x * y[:, :, None, None]


if __name__ == "__main__":
    # channel // 16 must be >= 1, so channel = 32; N = 8 exercises batch blocking.
    N, C, H, W = 8, 32, 16, 16
    Cr = C // 16

    key = jax.random.PRNGKey(0)
    kx, kw1, kb1, kw2, kb2 = jax.random.split(key, 5)

    x = jax.random.normal(kx, (N, C, H, W), dtype=jnp.float32)
    w1 = jax.random.normal(kw1, (Cr, C), dtype=jnp.float32) * 0.1      # conv1 weight (1x1)
    b1 = jax.random.normal(kb1, (Cr,), dtype=jnp.float32) * 0.1        # conv1 bias
    w2 = jax.random.normal(kw2, (C, Cr), dtype=jnp.float32) * 0.1      # conv2 weight (1x1)
    b2 = jax.random.normal(kb2, (C,), dtype=jnp.float32) * 0.1         # conv2 bias

    ref = _reference(x, w1, b1, w2, b2)

    # Path A: whole images per block (f32 streaming).
    out = jax.block_until_ready(ca_layer(x, w1, b1, w2, b2))
    assert out.shape == (N, C, H, W)
    assert jnp.allclose(out, ref, atol=1e-5, rtol=1e-5), "full-block path mismatch"

    # Path B: force the spatially tiled two-phase fallback (v7x large-image path).
    out_t = jax.block_until_ready(
        ca_layer(x, w1, b1, w2, b2, block_bytes_override=16 * 1024))
    assert jnp.allclose(out_t, ref, atol=1e-5, rtol=1e-5), "tiled path mismatch"

    # Native bf16 streaming (halves HBM bytes); kernel output dtype follows input.
    xb = x.astype(jnp.bfloat16)
    out_b = jax.block_until_ready(ca_layer(xb, w1, b1, w2, b2))
    assert out_b.dtype == jnp.bfloat16
    ref_b = _reference(xb.astype(jnp.float32), w1, b1, w2, b2)
    assert jnp.allclose(out_b.astype(jnp.float32), ref_b, atol=5e-2, rtol=5e-2), \
        "bf16 path mismatch"

    # Odd spatial size exercises zero-padding of the lane axis (HW=130 -> 256).
    x_odd = jax.random.normal(kx, (2, C, 10, 13), dtype=jnp.float32)
    out_odd = jax.block_until_ready(ca_layer(x_odd, w1, b1, w2, b2))
    ref_odd = _reference(x_odd, w1, b1, w2, b2)
    assert jnp.allclose(out_odd, ref_odd, atol=1e-5, rtol=1e-5), "padded path mismatch"

    print("KERNEL_OK")
</pallas_src>

<mosaic_0001>
module attributes {stable_mosaic.version = 11 : i64} {
  func.func @_ca_kernel_full(%arg0: i32, %arg1: memref<2x32x256xf32, #tpu.memory_space<vmem>>, %arg2: memref<2x32xf32, #tpu.memory_space<vmem>>, %arg3: memref<1x2xf32, #tpu.memory_space<vmem>>, %arg4: memref<2x32xf32, #tpu.memory_space<vmem>>, %arg5: memref<1x32xf32, #tpu.memory_space<vmem>>, %arg6: memref<2x32x256xf32, #tpu.memory_space<vmem>>) attributes {dimension_semantics = [#tpu.dimension_semantics<parallel>], iteration_bounds = array<i64: 4>, scalar_prefetch = 0 : i64, scratch_operands = 0 : i64, tpu.core_type = #tpu.core_type<tc>, window_params = [{transform_indices = @transform_0, window_bounds = array<i64: 2, 32, 256>}, {pipeline_mode = #tpu.pipeline_mode<synchronous>, transform_indices = @transform_1, window_bounds = array<i64: 2, 32>}, {pipeline_mode = #tpu.pipeline_mode<synchronous>, transform_indices = @transform_2, window_bounds = array<i64: 1, 2>}, {pipeline_mode = #tpu.pipeline_mode<synchronous>, transform_indices = @transform_3, window_bounds = array<i64: 2, 32>}, {pipeline_mode = #tpu.pipeline_mode<synchronous>, transform_indices = @transform_4, window_bounds = array<i64: 1, 32>}, {transform_indices = @transform_5, window_bounds = array<i64: 2, 32, 256>}]} {
    %c0 = arith.constant 0 : index
    %c0_0 = arith.constant 0 : index
    %c0_1 = arith.constant 0 : index
    %0 = vector.load %arg1[%c0, %c0_0, %c0_1] : memref<2x32x256xf32, #tpu.memory_space<vmem>>, vector<2x32x256xf32>
    %cst = arith.constant dense<0.000000e+00> : vector<2x32xf32>
    %1 = vector.multi_reduction <add>, %0, %cst [2] : vector<2x32x256xf32> to vector<2x32xf32>
    %cst_2 = arith.constant 3.906250e-03 : f32
    %2 = vector.broadcast %cst_2 : f32 to vector<2x32xf32>
    %3 = arith.mulf %1, %2 : vector<2x32xf32>
    %4 = vector.shape_cast %3 : vector<2x32xf32> to vector<2x1x32xf32>
    %c0_3 = arith.constant 0 : index
    %c0_4 = arith.constant 0 : index
    %5 = vector.load %arg2[%c0_3, %c0_4] : memref<2x32xf32, #tpu.memory_space<vmem>>, vector<2x32xf32>
    %6 = vector.shape_cast %5 : vector<2x32xf32> to vector<1x2x32xf32>
    %7 = vector.broadcast %4 : vector<2x1x32xf32> to vector<2x2x32xf32>
    %8 = vector.broadcast %6 : vector<1x2x32xf32> to vector<2x2x32xf32>
    %9 = arith.mulf %7, %8 : vector<2x2x32xf32>
    %cst_5 = arith.constant dense<0.000000e+00> : vector<2x2xf32>
    %10 = vector.multi_reduction <add>, %9, %cst_5 [2] : vector<2x2x32xf32> to vector<2x2xf32>
    %c0_6 = arith.constant 0 : index
    %c0_7 = arith.constant 0 : index
    %11 = vector.load %arg3[%c0_6, %c0_7] : memref<1x2xf32, #tpu.memory_space<vmem>>, vector<1x2xf32>
    %12 = vector.broadcast %11 : vector<1x2xf32> to vector<2x2xf32>
    %13 = arith.addf %10, %12 : vector<2x2xf32>
    %cst_8 = arith.constant 0.000000e+00 : f32
    %14 = vector.broadcast %cst_8 : f32 to vector<2x2xf32>
    %15 = arith.cmpf oge, %13, %14 : vector<2x2xf32>
    %cst_9 = arith.constant 1.000000e-01 : f32
    %16 = vector.broadcast %cst_9 : f32 to vector<2x2xf32>
    %17 = arith.mulf %16, %13 : vector<2x2xf32>
    %18 = arith.select %15, %13, %17 : vector<2x2xi1>, vector<2x2xf32>
    %19 = vector.shape_cast %18 : vector<2x2xf32> to vector<2x2x1xf32>
    %c0_10 = arith.constant 0 : index
    %c0_11 = arith.constant 0 : index
    %20 = vector.load %arg4[%c0_10, %c0_11] : memref<2x32xf32, #tpu.memory_space<vmem>>, vector<2x32xf32>
    %21 = vector.shape_cast %20 : vector<2x32xf32> to vector<1x2x32xf32>
    %22 = vector.broadcast %19 : vector<2x2x1xf32> to vector<2x2x32xf32>
    %23 = vector.broadcast %21 : vector<1x2x32xf32> to vector<2x2x32xf32>
    %24 = arith.mulf %22, %23 : vector<2x2x32xf32>
    %cst_12 = arith.constant dense<0.000000e+00> : vector<2x32xf32>
    %25 = vector.multi_reduction <add>, %24, %cst_12 [1] : vector<2x2x32xf32> to vector<2x32xf32>
    %c0_13 = arith.constant 0 : index
    %c0_14 = arith.constant 0 : index
    %26 = vector.load %arg5[%c0_13, %c0_14] : memref<1x32xf32, #tpu.memory_space<vmem>>, vector<1x32xf32>
    %27 = vector.broadcast %26 : vector<1x32xf32> to vector<2x32xf32>
    %28 = arith.addf %25, %27 : vector<2x32xf32>
    %29 = arith.negf %28 : vector<2x32xf32>
    %30 = math.exp %29 : vector<2x32xf32>
    %cst_15 = arith.constant 1.000000e+00 : f32
    %31 = vector.broadcast %cst_15 : f32 to vector<2x32xf32>
    %32 = arith.addf %31, %30 : vector<2x32xf32>
    %33 = arith.divf %31, %32 : vector<2x32xf32>
    %c0_16 = arith.constant 0 : index
    %c0_17 = arith.constant 0 : index
    %c0_18 = arith.constant 0 : index
    %34 = vector.load %arg1[%c0_16, %c0_17, %c0_18] : memref<2x32x256xf32, #tpu.memory_space<vmem>>, vector<2x32x256xf32>
    %35 = vector.shape_cast %33 : vector<2x32xf32> to vector<2x32x1xf32>
    %36 = vector.broadcast %35 : vector<2x32x1xf32> to vector<2x32x256xf32>
    %37 = arith.mulf %34, %36 : vector<2x32x256xf32>
    %c0_19 = arith.constant 0 : index
    %c0_20 = arith.constant 0 : index
    %c0_21 = arith.constant 0 : index
    %38 = vector.load %arg6[%c0_19, %c0_20, %c0_21] : memref<2x32x256xf32, #tpu.memory_space<vmem>>, vector<2x32x256xf32>
    tpu.vector_store %arg6[%c0_19, %c0_20, %c0_21], %37 {strides = array<i32>} : memref<2x32x256xf32, #tpu.memory_space<vmem>>, vector<2x32x256xf32>,
    return
  }
  func.func @transform_0(%arg0: i32) -> (i32, i32, i32) {
    %c0_i32 = arith.constant 0 : i32
    %c0_i32_0 = arith.constant 0 : i32
    %c0_i32_1 = arith.constant 0 : i32
    return %arg0, %c0_i32, %c0_i32_0 : i32, i32, i32
  }
  func.func @transform_1(%arg0: i32) -> (i32, i32) {
    %c0_i32 = arith.constant 0 : i32
    %c0_i32_0 = arith.constant 0 : i32
    %c0_i32_1 = arith.constant 0 : i32
    return %c0_i32, %c0_i32_0 : i32, i32
  }
  func.func @transform_2(%arg0: i32) -> (i32, i32) {
    %c0_i32 = arith.constant 0 : i32
    %c0_i32_0 = arith.constant 0 : i32
    %c0_i32_1 = arith.constant 0 : i32
    return %c0_i32, %c0_i32_0 : i32, i32
  }
  func.func @transform_3(%arg0: i32) -> (i32, i32) {
    %c0_i32 = arith.constant 0 : i32
    %c0_i32_0 = arith.constant 0 : i32
    %c0_i32_1 = arith.constant 0 : i32
    return %c0_i32, %c0_i32_0 : i32, i32
  }
  func.func @transform_4(%arg0: i32) -> (i32, i32) {
    %c0_i32 = arith.constant 0 : i32
    %c0_i32_0 = arith.constant 0 : i32
    %c0_i32_1 = arith.constant 0 : i32
    return %c0_i32, %c0_i32_0 : i32, i32
  }
  func.func @transform_5(%arg0: i32) -> (i32, i32, i32) {
    %c0_i32 = arith.constant 0 : i32
    %c0_i32_0 = arith.constant 0 : i32
    %c0_i32_1 = arith.constant 0 : i32
    return %arg0, %c0_i32, %c0_i32_0 : i32, i32, i32
  }
}

</mosaic_0001>

<bundles_post_ra>
// kernel: tpu_custom_call.1
= control target key start
LH: loop header
LB: loop body
LE: loop exit
PB: predicated region body
PF: predicated region fallthrough
CT: control target
= control target key end

     0   :  { %10 = vsyncpa [#allocation3], 0  ;;  %s1333_s0 = inlined_call_operand.hbm [shape: f32[8,32,256], index: 0, kind: input, shape index: {}]   ;;  %s1334_s1 = inlined_call_operand.hbm [shape: f32[2,32], index: 1, kind: input, shape index: {}]   ;;  %s1335_s2 = inlined_call_operand.vmem [shape: f32[1,2], index: 2, kind: input, shape index: {}]   ;;  %s1336_s3 = inlined_call_operand.vmem [shape: f32[2,32], index: 3, kind: input, shape index: {}]   ;;  %s1337_s4 = inlined_call_operand.vmem [shape: f32[1,32], index: 4, kind: input, shape index: {}]   ;;  %s1338_s5 = inlined_call_operand.hbm [shape: f32[8,32,256], index: 5, kind: output, shape index: {}]  }
   0x1   :  { %12 = vsyncpa [#allocation3 + $0x1], 0 }
   0x2   :  { %13 = vsyncpa [#allocation6], 0 }
   0x3   :  { %14 = vsyncpa [#allocation4], 0 }
   0x4   :  { %16 = vsyncpa [#allocation4 + $0x1], 0  ;;  %s1025_s18 = smov 0   ;;  %s1027_s19 = smov 0  }
   0x5   :  { %s1029_s20 = smov 0   ;;  %s1031_s21 = smov 0  }
   0x6 LB: > { %s1046_s22 = sadd.s32 4294967295, %s985_s21   ;;  %s765_s23 = sadd.s32 4294967294, %s985_s21   ;;  %s985_s21 = sphi %s1031_s21, %s1359_s21   ;;  %s981_s20 = sphi %s1029_s20, %s1358_s20   ;;  %s977_s19 = sphi %s1027_s19, %s1357_s19   ;;  %s973_s18 = sphi %s1025_s18, %s1356_s18  }
   0x7   : > { %s1050_s24 = sadd.s32 1, %s985_s21   ;;  %s29_s25 = sadd.s32 1, %s981_s20 }
   0x8   : > { %s26_s26 = ssub.s32 %s985_s21, %s1050_s24  ;;  %p36_p0 = scmp.ne.s32.totalorder %s981_s20, %s977_s19 }
   0x9   : > { %p27_p1 = scmp.eq.s32.totalorder %s26_s26, 0  ;;  %p37_p2 = scmp.eq.s32.totalorder %s985_s21, 0 }
   0xa   : > { %p42_p3 = scmp.ne.s32.totalorder %s977_s19, %s973_s18  ;;  %p1340_p4 = scmp.eq.s32.totalorder %s1046_s22, 0 }
   0xb   : > { %s1062_s27 = scalar_select %p27_p1, %s981_s20, %s29_s25  }
   0xc   : > { %p1064_p5 = por %p37_p2, %p36_p0  ;;  %p1070_p6 = por %p1340_p4, %p42_p3 }
   0xd   : > { %p150_p7 = scmp.eq.s32.totalorder %s1046_s22, 3  ;;  %p156_p8 = scmp.eq.s32.totalorder %s765_s23, 3 }
   0xe   : > { %s1344_s29 = scalar_select %p1070_p6, 1, 0 }
   0xf   : > { %p766_p9 = scmp.ge.s32.totalorder %s985_s21, 1  ;;  %p163_p10 = scmp.lt.s32.totalorder %s985_s21, 5 }
  0x10   : > { %p1077_p11 = por %p150_p7, %p36_p0  ;;  %p1081_p12 = por %p156_p8, %p42_p3 }
  0x11   : > { %p1085_p13 = pnand %p766_p9, %p163_p10  ;;  %s987_s8 = smov [#allocation5]  }
  0x12   : > { %s1345_s30 = scalar_select %p1077_p11, 1, 0 }
  0x13   : > { %s1346_s6 = scalar_select %p1081_p12, 1, 0 }
  0x14   : > { %s1347_s7 = scalar_select %p1085_p13, 1, 0 }
  0x15   : > { %p799_p1 = pneg %p1085_p13  ;;  %s176_s9 = sshll.u32 %s987_s8, 4  ;;  %s177_s9 = int_to_ptr.vmem [resolvable:$true] %s176_s9 }
  0x16   : > { %p812_p2 = scmp.lt.s32.totalorder %s985_s21, 4  ;;  %s196_s11 = sand.u32 1, %s981_s20  }
  0x17   : > { %p1094_p0 = pnand %p799_p1, %p1340_p4  ;;  %s769_s13 = sshll.u32 %s196_s11, 7 }
  0x18   : > { %p1101_p3 = pnand %p812_p2, %p1064_p5  ;;  %s874_s14 = scalar_lea.vmem %s177_s9, 32 }
  0x19   : > { %p865_p7 = pneg %p1094_p0  ;;  %p875_p8 = scmp.ne.s32.totalorder %s177_s9, %s874_s14 }
  0x1a   : > { %p882_p12 = scmp.lt.s32.totalorder %s177_s9, %s177_s9  ;;  %p883_p11 = scmp.lt.s32.totalorder %s874_s14, %s874_s14 }
  0x1b   : > { %p877_p9 = pnand %p875_p8, %p865_p7 }
  0x1c   : > { %p884_p1 = por %p883_p11, %p882_p12 }
  0x1d   : > { %p878_p10 = pneg %p877_p9 }
  0x1f   : > { %p885_p4 = pnand %p884_p1, %p878_p10 }
  0x21   : > { %888 = shalt.err (!%p885_p4)
}
  0x22   : > { %802 = dma.hbm_to_vmem [thread:$0]  (!%p1094_p0), %s1334_s1, 32, %s177_s9, [#allocation6]  }
  0x23   : > { %s788_s17 = sshll.u32 %s985_s21, 11  ;;  %s200_s23 = scalar_lea.vmem [#allocation2], %s769_s13 }
  0x24   : > { %s208_s25 = sshll.u32 %s200_s23, 4  ;;  %s1116_s8 = scalar_lea.hbm %s1333_s0, %s788_s17  ;;  %s1118_s25 = int_to_ptr.vmem [resolvable:$true] %s208_s25 }
  0x25   : > { %s1120_s10 = scalar_lea.sflag [#allocation3], %s196_s11  ;;  %s889_s14 = scalar_lea.hbm %s1116_s8, 2048 }
  0x26   : > { %p890_p4 = scmp.ne.s32.totalorder %s1116_s8, %s889_s14  ;;  %p891_p5 = pneg %p1101_p3 }
  0x27   : > { %s894_s15 = scalar_lea.hbm %s1333_s0, 8192  ;;  %p895_p2 = scmp.lt.s32.totalorder %s1116_s8, %s1333_s0 }
  0x28   : > { %p892_p11 = pnand %p891_p5, %p890_p4  ;;  %p896_p0 = scmp.lt.s32.totalorder %s894_s15, %s889_s14 }
  0x2a   : > { %p893_p12 = pneg %p892_p11  ;;  %p897_p7 = por %p896_p0, %p895_p2 }
  0x2c   : > { %p898_p8 = pnand %p897_p7, %p893_p12 }
  0x2e   : > { %901 = shalt.err (!%p898_p8)
}
  0x2f   : > { %s902_s11 = scalar_lea.vmem %s1118_s25, 2048  ;;  %s988_s23 = smov [#allocation2]  }
  0x30   : > { %p903_p9 = scmp.ne.s32.totalorder %s1118_s25, %s902_s11  ;;  %s907_s26 = sshll.u32 %s988_s23, 4  ;;  %s908_s26 = int_to_ptr.vmem [resolvable:$false] %s907_s26 }
  0x31   : > { %s909_s28 = scalar_lea.vmem %s908_s26, 4096  ;;  %p910_p4 = scmp.lt.s32.totalorder %s1118_s25, %s908_s26 }
  0x32   : > { %p905_p10 = pnand %p903_p9, %p891_p5  ;;  %p911_p11 = scmp.lt.s32.totalorder %s909_s28, %s902_s11 }
  0x34   : > { %p906_p1 = pneg %p905_p10  ;;  %p912_p6 = por %p911_p11, %p910_p4 }
  0x36   : > { %p913_p13 = pnand %p912_p6, %p906_p1 }
  0x38   : > { %916 = shalt.err (!%p913_p13)
}
  0x39   : > { %s989_s14 = smov 256   ;;  %s990_s9 = smov 16  }
  0x3a   : > { %806 = dma.hbm_to_vmem [thread:$0]  (!%p1101_p3), %s1116_s8, 2048, %s1118_s25, %s1120_s10, %s989_s14, %s989_s14, %s990_s9  }
  0x3b   : > { %p1350_p5 = scmp.ne.s32.totalorder %s1347_s7, 0 }
  0x3c   : > { %s1144_s13 = sand.u32 (!%p1350_p5), 1, %s977_s19   ;;  %p1351_p6 = scmp.ne.s32.totalorder (!%p1350_p5), %s1344_s29, 0 }
  0x3d   : > { %220 = sbr.rel (%p1350_p5) target bundleno = 856 (0x358), region = 40  ;;  %s774_s15 = sshll.u32 (!%p1350_p5), %s1144_s13, 7 }
  0x3e   : > { %s223_s16 = scalar_lea.sflag (!%p1350_p5), [#allocation3], %s1144_s13  ;;  %s226_s17 = scalar_lea.vmem (!%p1350_p5), [#allocation2], %s774_s15 }
  0x42   : > { %960 = dma.done.wait (%p1351_p6), %s223_s16, 2048  }
  0x43   : > { %962 = vsyncadd (%p1351_p6), %s223_s16, 4294965248  ;;  %p1352_p13 = scmp.eq.s32.totalorder %s1046_s22, 0 }
  0x45   : > { %964 = dma.done.wait (%p1352_p13), [#allocation6], 32   ;;  %p1353_p3 = pmov %p1352_p13 }
  0x46   : > { %v1158_v0 = vld [vmem:[%s226_s17 + $0x40] sm:$0xff]  ;;  %v1160_v1 = vld [vmem:[%s226_s17 + $0x48] sm:$0xff]  ;;  %v1168_v5 = vld [vmem:[%s226_s17 + $0x50] sm:$0xff]  ;;  %v309_v24 = vlaneseq  ;;  %v991_v30 = vmov 0   ;;  %vm446_vm0 = vcmask 130112   ;;  %vm453_vm1 = vcmask 195712  }
  0x47   : > { %966 = vsyncadd (%p1353_p3), [#allocation6], 4294967264  ;;  %v1162_v2 = vld [vmem:[%s226_s17] sm:$0xff]  ;;  %v287_v3 = vadd.f32 %v1160_v1, %v1158_v0  ;;  %v1166_v4 = vld [vmem:[%s226_s17 + $0x8] sm:$0xff]  ;;  %854 = vset.pattern.permute.xlu1 %v991_v30  ;;  %853 = vset.pattern.permute.xlu0 %v991_v30  ;;  %vm460_vm2 = vcmask 261312   ;;  %vm519_vm3 = vcmask 1041409  }
  0x48   : > { %v1170_v6 = vld [vmem:[%s226_s17 + $0x58] sm:$0xff]  ;;  %v275_v7 = vadd.f32 %v1166_v4, %v1162_v2  ;;  %v1174_v8 = vld [vmem:[%s226_s17 + $0x10] sm:$0xff]  ;;  %v1182_v12 = vld [vmem:[%s226_s17 + $0x60] sm:$0xff]  ;;  %v1207_v25 = vshrl.u32 %v309_v24, 7  ;;  %vm524_vm4 = vcmask 254976   ;;  %s1254_s11 = scalar_lea.vmem [#allocation7], %s774_s15 }
  0x49   : > { %v1176_v9 = vld [vmem:[%s226_s17 + $0x18] sm:$0xff]  ;;  %288 = vadd.xlane.f32.xlu1 %v287_v3  ;;  %v290_v10 = vadd.f32 %v1170_v6, %v1168_v5  ;;  %v1184_v13 = vld [vmem:[%s226_s17 + $0x68] sm:$0xff]  ;;  %v1186_v14 = vld [vmem:[%s226_s17 + $0x20] sm:$0xff]  ;;  %s790_s23 = sshll.u32 %s1046_s22, 11  ;;  %s682_s26 = sshll.u32 %s1254_s11, 4  ;;  %s1283_s26 = int_to_ptr.vmem [resolvable:$true] %s682_s26 }
  0x4a   : > { %276 = vadd.xlane.f32.xlu0 %v275_v7  ;;  %v278_v11 = vadd.f32 %v1176_v9, %v1174_v8  ;;  %v1188_v15 = vld [vmem:[%s226_s17 + $0x28] sm:$0xff]  ;;  %v293_v16 = vadd.f32 %v1184_v13, %v1182_v12  ;;  %v1194_v18 = vld [vmem:[%s226_s17 + $0x70] sm:$0xff]  ;;  %v1196_v19 = vld [vmem:[%s226_s17 + $0x78] sm:$0xff]  ;;  %v1210_v26 = vsub.s32 0, %v1207_v25  ;;  %v330_v29 = vsub.s32 1, %v1207_v25  ;;  %s1281_s9 = scalar_lea.hbm %s1338_s5, %s790_s23  ;;  %s668_s22 = scalar_lea.sflag [#allocation4], %s1144_s13 }
  0x4b   : > { %v281_v17 = vadd.f32 %v1188_v15, %v1186_v14  ;;  %v1198_v20 = vld [vmem:[%s226_s17 + $0x30] sm:$0xff]  ;;  %v1200_v21 = vld [vmem:[%s226_s17 + $0x38] sm:$0xff]  ;;  %v296_v22 = vadd.f32 %v1196_v19, %v1194_v18  ;;  %v307_v27 = vld [vmem:[#allocation5] sm:$0x3]  ;;  %s917_s15 = scalar_lea.vmem %s1283_s26, 2048  ;;  %p1354_p2 = scmp.ne.s32.totalorder %s1345_s30, 0 }
  0x4c   : > { %v284_v23 = vadd.f32 %v1200_v21, %v1198_v20  ;;  %v312_v28 = vrot.slane %v307_v27, %v1210_v26  ;;  %v331_v31 = vrot.slane %v307_v27, %v330_v29  ;;  %p918_p12 = scmp.ne.s32.totalorder %s1283_s26, %s917_s15  ;;  %s992_s16 = smov [#allocation7]  }
  0x4d   : > { %291 = vadd.xlane.f32.xlu1 %v290_v10  ;;  %s921_s17 = sshll.u32 %s992_s16, 4  ;;  %s922_s17 = int_to_ptr.vmem [resolvable:$false] %s921_s17 }
  0x4e   : > { %279 = vadd.xlane.f32.xlu0 %v278_v11  ;;  %p919_p0 = pnand %p918_p12, %p1354_p2  ;;  %s923_s29 = scalar_lea.vmem %s922_s17, 4096 }
  0x4f   : > { %p924_p8 = scmp.lt.s32.totalorder %s1283_s26, %s922_s17  ;;  %p925_p9 = scmp.lt.s32.totalorder %s923_s29, %s917_s15 }
  0x50   : > { %p920_p7 = pneg %p919_p0 }
  0x51   : > { %294 = vadd.xlane.f32.xlu1 %v293_v16  ;;  %p926_p10 = por %p925_p9, %p924_p8 }
  0x52   : > { %282 = vadd.xlane.f32.xlu0 %v281_v17 }
  0x53   : > { %p927_p1 = pnand %p926_p10, %p920_p7 }
  0x55   : > { %297 = vadd.xlane.f32.xlu1 %v296_v22 }
  0x56   : > { %285 = vadd.xlane.f32.xlu0 %v284_v23 }
  0x66   : > { %318 = vbcast.lane.b32.xlu1 %v312_v28, 264 }
  0x6a   : > { %333 = vbcast.lane.b32.xlu1 %v331_v31, 256 }
  0x6c   : > { %314 = vbcast.lane.b32.xlu0 %v312_v28, 256 }
  0x6e   : > { %337 = vbcast.lane.b32.xlu1 %v331_v31, 264 }
  0x70   : > { %322 = vbcast.lane.b32.xlu0 %v312_v28, 272 }
  0x72   : > { %341 = vbcast.lane.b32.xlu1 %v331_v31, 272 }
  0x74   : > { %326 = vbcast.lane.b32.xlu0 %v312_v28, 280 }
  0x76   : > { %345 = vbcast.lane.b32.xlu1 %v331_v31, 280 }
  0xd2   : > { %v289_v32 = vpop.xlane.xlu1 %288 }
  0xd3   : > { %v277_v33 = vpop.xlane.xlu0 %276  ;;  %v303_v48 = vmul.f32 0.00390625, %v289_v32  ;;  %v436_v32 = vand.u32 127, %v309_v24 }
  0xd4   : > { %v299_v41 = vmul.f32 0.00390625, %v277_v33 }
  0xd6   : > { %v292_v34 = vpop.xlane.xlu1 %291 }
  0xd7   : > { %v280_v35 = vpop.xlane.xlu0 %279  ;;  %v304_v52 = vmul.f32 0.00390625, %v292_v34 }
  0xd8   : > { %v300_v40 = vmul.f32 0.00390625, %v280_v35  ;;  %v441_v35 = vadd.s32 4294967288, %v436_v32 }
  0xda   : > { %v295_v36 = vpop.xlane.xlu1 %294 }
  0xdb   : > { %v283_v37 = vpop.xlane.xlu0 %282  ;;  %v305_v60 = vmul.f32 0.00390625, %v295_v36 }
  0xdc   : > { %v301_v56 = vmul.f32 0.00390625, %v283_v37 }
  0xde   : > { %v298_v38 = vpop.xlane.xlu1 %297 }
  0xdf   : > { %v286_v39 = vpop.xlane.xlu0 %285  ;;  %v306_v16 = vmul.f32 0.00390625, %v298_v38  ;;  %v448_v38 = vadd.s32 4294967280, %v436_v32 }
  0xe0   : > { %v302_v3 = vmul.f32 0.00390625, %v286_v39  ;;  %v455_v39 = vadd.s32 4294967272, %v436_v32 }
  0xe2   : > { %v319_v42 = vpop.permute.xlu1 %318 }
  0xe3   : > { %v356_v43 = vmul.f32 %v319_v42, %v300_v40  ;;  %v315_v44 = vpop.permute.xlu0 %314  ;;  %v364_v53 = vmul.f32 %v319_v42, %v304_v52 }
  0xe4   : > { %v355_v45 = vmul.f32 %v315_v44, %v299_v41  ;;  %v363_v50 = vmul.f32 %v315_v44, %v303_v48  ;;  %v451_v44 = vsub.s32 %v448_v38, %v1207_v25 }
  0xe5   : > { %391 = vperm.xlu1 %854, %v356_v43  }
  0xe6   : > { %388 = vperm.xlu0 %853, %v355_v45   ;;  %v334_v46 = vpop.permute.xlu1 %333  ;;  %v458_v45 = vsub.s32 %v455_v39, %v1207_v25 }
  0xe7   : > { %v359_v47 = vmul.f32 %v334_v46, %v299_v41  ;;  %v367_v54 = vmul.f32 %v334_v46, %v303_v48  ;;  %v323_v55 = vpop.permute.xlu0 %322  ;;  %v439_v41 = vsub.s32 %v436_v32, %v1207_v25 }
  0xe8   : > { %v357_v57 = vmul.f32 %v323_v55, %v301_v56  ;;  %v365_v61 = vmul.f32 %v323_v55, %v305_v60 }
  0xe9   : > { %400 = vperm.xlu1 %854, %v359_v47  }
  0xea   : > { %v338_v49 = vpop.permute.xlu1 %337 }
  0xeb   : > { %v360_v51 = vmul.f32 %v338_v49, %v300_v40  ;;  %v368_v58 = vmul.f32 %v338_v49, %v304_v52  ;;  %v327_v63 = vpop.permute.xlu0 %326  ;;  %v444_v40 = vsub.s32 %v441_v35, %v1207_v25 }
  0xec   : > { %v358_v7 = vmul.f32 %v327_v63, %v302_v3  ;;  %v366_v17 = vmul.f32 %v327_v63, %v306_v16 }
  0xed   : > { %412 = vperm.xlu1 %854, %v363_v50   ;;  %403 = vperm.xlu0 %853, %v360_v51  }
  0xee   : > { %v342_v59 = vpop.permute.xlu1 %341 }
  0xef   : > { %v361_v62 = vmul.f32 %v342_v59, %v301_v56  ;;  %v369_v10 = vmul.f32 %v342_v59, %v305_v60 }
  0xf1   : > { %424 = vperm.xlu1 %854, %v367_v54   ;;  %415 = vperm.xlu0 %853, %v364_v53  }
  0xf2   : > { %v346_v11 = vpop.permute.xlu1 %345 }
  0xf3   : > { %v362_v22 = vmul.f32 %v346_v11, %v302_v3  ;;  %v370_v23 = vmul.f32 %v346_v11, %v306_v16 }
  0xf5   : > { %427 = vperm.xlu0 %853, %v368_v58   ;;  %394 = vperm.xlu1 %854, %v357_v57  }
  0xf9   : > { %406 = vperm.xlu0 %853, %v361_v62   ;;  %418 = vperm.xlu1 %854, %v365_v61  }
  0xfd   : > { %430 = vperm.xlu0 %853, %v369_v10   ;;  %397 = vperm.xlu1 %854, %v358_v7  }
 0x101   : > { %409 = vperm.xlu0 %853, %v362_v22   ;;  %421 = vperm.xlu1 %854, %v366_v17  }
 0x105   : > { %433 = vperm.xlu0 %853, %v370_v23  }
 0x160   : > { %v392_v27 = vpop.permute.xlu1 %391 }
 0x161   : > { %v389_v28 = vpop.permute.xlu0 %388  ;;  %v445_v46 = vrot.slane %v392_v27, %v444_v40 }
 0x162   : > { %v440_v47 = vrot.slane %v389_v28, %v439_v41 }
 0x164   : > { %v401_v29 = vpop.permute.xlu1 %400  ;;  %v447_v54 = vsel %vm446_vm0, %v445_v46, %v440_v47  ;;  %v549_v46 = vld [vmem:[%s1336_s3] sm:$0x3] }
 0x165   : > { %v465_v52 = vrot.slane %v401_v29, %v439_v41 }
 0x168   : > { %v413_v30 = vpop.permute.xlu1 %412  ;;  %v404_v31 = vpop.permute.xlu0 %403 }
 0x169   : > { %v469_v49 = vrot.slane %v404_v31, %v444_v40  ;;  %v484_v55 = vrot.slane %v413_v30, %v439_v41 }
 0x16b   : > { %v470_v25 = vsel %vm446_vm0, %v469_v49, %v465_v52 }
 0x16c   : > { %v425_v33 = vpop.permute.xlu1 %424  ;;  %v416_v34 = vpop.permute.xlu0 %415 }
 0x16d   : > { %v488_v58 = vrot.slane %v416_v34, %v444_v40  ;;  %v503_v7 = vrot.slane %v425_v33, %v439_v41 }
 0x16f   : > { %v489_v23 = vsel %vm446_vm0, %v488_v58, %v484_v55 }
 0x170   : > { %v395_v36 = vpop.permute.xlu1 %394  ;;  %v428_v37 = vpop.permute.xlu0 %427 }
 0x171   : > { %v452_v50 = vrot.slane %v395_v36, %v451_v44  ;;  %v507_v59 = vrot.slane %v428_v37, %v444_v40  ;;  %v777_v36 = vld [vmem:[%s1335_s2] ss:$0 sm:$0xff] }
 0x173   : > { %v454_v61 = vsel %vm453_vm1, %v452_v50, %v447_v54  ;;  %v508_v27 = vsel %vm446_vm0, %v507_v59, %v503_v7  ;;  %v778_v59 = vld [vmem:[%s1337_s4] ss:$0 sm:$0xff] }
 0x174   : > { %v419_v42 = vpop.permute.xlu1 %418  ;;  %v407_v43 = vpop.permute.xlu0 %406 }
 0x175   : > { %v474_v51 = vrot.slane %v407_v43, %v451_v44  ;;  %v493_v62 = vrot.slane %v419_v42, %v451_v44 }
 0x177   : > { %v475_v63 = vsel %vm453_vm1, %v474_v51, %v470_v25  ;;  %v494_v30 = vsel %vm453_vm1, %v493_v62, %v489_v23 }
 0x178   : > { %v398_v24 = vpop.permute.xlu1 %397  ;;  %v431_v48 = vpop.permute.xlu0 %430 }
 0x179   : > { %v459_v53 = vrot.slane %v398_v24, %v458_v45  ;;  %v512_v3 = vrot.slane %v431_v48, %v451_v44 }
 0x17b   : > { %v461_v11 = vsel %vm460_vm2, %v459_v53, %v454_v61  ;;  %v513_v31 = vsel %vm453_vm1, %v512_v3, %v508_v27 }
 0x17c   : > { %v422_v56 = vpop.permute.xlu1 %421  ;;  %v410_v57 = vpop.permute.xlu0 %409 }
 0x17d   : > { %v479_v60 = vrot.slane %v410_v57, %v458_v45  ;;  %v498_v10 = vrot.slane %v422_v56, %v458_v45 }
 0x17f   : > { %v480_v16 = vsel %vm460_vm2, %v479_v60, %v475_v63  ;;  %v499_v32 = vsel %vm460_vm2, %v498_v10, %v494_v30 }
 0x180   : > { %v434_v17 = vpop.permute.xlu0 %433  ;;  %v520_v22 = vsel %vm519_vm3, %v480_v16, %v461_v11 }
 0x181   : > { %v517_v28 = vrot.slane %v434_v17, %v458_v45  ;;  %v525_v29 = vsel %vm524_vm4, %v520_v22, 0.0 }
 0x182   : > { %526 = vadd.xlane.f32.xlu1 %v525_v29 }
 0x183   : > { %v518_v33 = vsel %vm460_vm2, %v517_v28, %v513_v31 }
 0x184   : > { %v521_v34 = vsel %vm519_vm3, %v518_v33, %v499_v32 }
 0x185   : > { %v528_v35 = vsel %vm524_vm4, %v521_v34, 0.0 }
 0x186   : > { %529 = vadd.xlane.f32.xlu0 %v528_v35 }
 0x19c   : > { %538 = vbcast.lane.b32.xlu0 %v777_v36, 256 }
 0x20b   : > { %v527_v38 = vpop.xlane.xlu1 %526 }
 0x20f   : > { %v530_v37 = vpop.xlane.xlu0 %529 }
 0x213   : > { %v539_v39 = vpop.permute.xlu0 %538 }
 0x214   : > { %v541_v40 = vadd.f32 %v539_v39, %v527_v38  ;;  %v542_v41 = vadd.f32 %v539_v39, %v530_v37 }
 0x216   : > { %vm543_vm5 = vcmp.ge.f32.partialorder %v541_v40, 0.0  ;;  %v545_v42 = vmul.f32 0.1, %v541_v40  ;;  %v546_v44 = vmul.f32 0.1, %v542_v41  ;;  %vm544_vm6 = vcmp.ge.f32.partialorder %v542_v41, 0.0 }
 0x218   : > { %v547_v43 = vsel %vm543_vm5, %v541_v40, %v545_v42  ;;  %v548_v45 = vsel %vm544_vm6, %v542_v41, %v546_v44 }
 0x219   : > { %552 = vperm.xlu1 %854, %v547_v43  }
 0x21d   : > { %557 = vperm.xlu1 %854, %v548_v45  }
 0x294   : > { %v553_v47 = vpop.permute.xlu1 %552 }
 0x295   : > { %v560_v24 = vmul.f32 %v553_v47, %v549_v46 }
 0x297   : > { %v562_v48 = vsel %vm524_vm4, %v560_v24, 0.0 }
 0x298   : > { %v563_v49 = vrot.slane %v562_v48, 4  ;;  %v558_v50 = vpop.permute.xlu1 %557 }
 0x299   : > { %v561_v51 = vmul.f32 %v558_v50, %v549_v46 }
 0x29a   : > { %v564_v52 = vadd.f32 %v563_v49, %v562_v48 }
 0x29b   : > { %v569_v53 = vsel %vm524_vm4, %v561_v51, 0.0 }
 0x29c   : > { %v565_v54 = vrot.slane %v564_v52, 2  ;;  %v570_v55 = vrot.slane %v569_v53, 4 }
 0x29e   : > { %v566_v56 = vadd.f32 %v565_v54, %v564_v52  ;;  %v571_v57 = vadd.f32 %v570_v55, %v569_v53 }
 0x2a0   : > { %v567_v25 = vrot.slane %v566_v56, 1  ;;  %v572_v58 = vrot.slane %v571_v57, 2 }
 0x2a2   : > { %v568_v60 = vadd.f32 %v567_v25, %v566_v56  ;;  %v573_v61 = vadd.f32 %v572_v58, %v571_v57 }
 0x2a4   : > { %v583_v62 = vadd.f32 %v778_v59, %v568_v60  ;;  %v574_v63 = vrot.slane %v573_v61, 1 }
 0x2a6   : > { %v779_v3 = vmul.f32 -1.442695, %v583_v62  ;;  %v575_v7 = vadd.f32 %v574_v63, %v573_v61 }
 0x2a8   : > { %855 = vpow2.f32 %v779_v3  ;;  %v584_v10 = vadd.f32 %v778_v59, %v575_v7 }
 0x2aa   : > { %v780_v11 = vmul.f32 -1.442695, %v584_v10 }
 0x2ac   : > { %857 = vpow2.f32 %v780_v11 }
 0x2b5   : > { %v856_v16 = vpop.eup %855 }
 0x2b6   : > { %v591_v17 = vadd.f32 1.0, %v856_v16 }
 0x2b8   : > { %859 = vrcp.f32 %v591_v17 }
 0x2b9   : > { %v858_v22 = vpop.eup %857 }
 0x2ba   : > { %v592_v23 = vadd.f32 1.0, %v858_v22 }
 0x2bc   : > { %861 = vrcp.f32 %v592_v23 }
 0x2c5   : > { %v860_v27 = vpop.eup %859 }
 0x2c6   : > { %v600_v28 = vrot.slane %v860_v27, %v1210_v26 }
 0x2c8   : > { %606 = vbcast.lane.b32.xlu1 %v600_v28, 264  ;;  %602 = vbcast.lane.b32.xlu0 %v600_v28, 256 }
 0x2c9   : > { %v862_v29 = vpop.eup %861 }
 0x2ca   : > { %v619_v30 = vrot.slane %v862_v29, %v1210_v26 }
 0x2cc   : > { %614 = vbcast.lane.b32.xlu1 %v600_v28, 280  ;;  %610 = vbcast.lane.b32.xlu0 %v600_v28, 272 }
 0x2d0   : > { %625 = vbcast.lane.b32.xlu1 %v619_v30, 264  ;;  %621 = vbcast.lane.b32.xlu0 %v619_v30, 256 }
 0x2d4   : > { %633 = vbcast.lane.b32.xlu1 %v619_v30, 280  ;;  %629 = vbcast.lane.b32.xlu0 %v619_v30, 272 }
 0x33a   : > { %v603_v31 = vpop.permute.xlu0 %602  ;;  %v607_v32 = vpop.permute.xlu1 %606 }
 0x33b   : > { %v635_v33 = vmul.f32 %v603_v31, %v1162_v2  ;;  %v636_v34 = vmul.f32 %v603_v31, %v1166_v4  ;;  %v637_v35 = vmul.f32 %v607_v32, %v1174_v8  ;;  %v638_v36 = vmul.f32 %v607_v32, %v1176_v9 }
 0x33d   : > { %651 = vst [vmem:[%s1254_s11] sm:$0xff] %v635_v33  ;;  %652 = vst [vmem:[%s1254_s11 + $0x8] sm:$0xff] %v636_v34 }
 0x33e   : > { %653 = vst [vmem:[%s1254_s11 + $0x10] sm:$0xff] %v637_v35  ;;  %654 = vst [vmem:[%s1254_s11 + $0x18] sm:$0xff] %v638_v36  ;;  %v611_v2 = vpop.permute.xlu0 %610  ;;  %v615_v4 = vpop.permute.xlu1 %614 }
 0x33f   : > { %v639_v8 = vmul.f32 %v611_v2, %v1186_v14  ;;  %v640_v9 = vmul.f32 %v611_v2, %v1188_v15  ;;  %v641_v26 = vmul.f32 %v615_v4, %v1198_v20  ;;  %v642_v37 = vmul.f32 %v615_v4, %v1200_v21 }
 0x341   : > { %655 = vst [vmem:[%s1254_s11 + $0x20] sm:$0xff] %v639_v8  ;;  %656 = vst [vmem:[%s1254_s11 + $0x28] sm:$0xff] %v640_v9 }
 0x342   : > { %657 = vst [vmem:[%s1254_s11 + $0x30] sm:$0xff] %v641_v26  ;;  %658 = vst [vmem:[%s1254_s11 + $0x38] sm:$0xff] %v642_v37  ;;  %v622_v38 = vpop.permute.xlu0 %621  ;;  %v626_v39 = vpop.permute.xlu1 %625 }
 0x343   : > { %v643_v40 = vmul.f32 %v622_v38, %v1158_v0  ;;  %v644_v14 = vmul.f32 %v622_v38, %v1160_v1  ;;  %v645_v41 = vmul.f32 %v626_v39, %v1168_v5  ;;  %v646_v15 = vmul.f32 %v626_v39, %v1170_v6 }
 0x345   : > { %659 = vst [vmem:[%s1254_s11 + $0x40] sm:$0xff] %v643_v40  ;;  %660 = vst [vmem:[%s1254_s11 + $0x48] sm:$0xff] %v644_v14 }
 0x346   : > { %661 = vst [vmem:[%s1254_s11 + $0x50] sm:$0xff] %v645_v41  ;;  %662 = vst [vmem:[%s1254_s11 + $0x58] sm:$0xff] %v646_v15  ;;  %v630_v20 = vpop.permute.xlu0 %629  ;;  %v634_v0 = vpop.permute.xlu1 %633 }
 0x347   : > { %v647_v1 = vmul.f32 %v630_v20, %v1182_v12  ;;  %v648_v5 = vmul.f32 %v630_v20, %v1184_v13  ;;  %v649_v6 = vmul.f32 %v634_v0, %v1194_v18  ;;  %v650_v21 = vmul.f32 %v634_v0, %v1196_v19 }
 0x349   : > { %663 = vst [vmem:[%s1254_s11 + $0x60] sm:$0xff] %v647_v1  ;;  %664 = vst [vmem:[%s1254_s11 + $0x68] sm:$0xff] %v648_v5 }
 0x34a   : > { %665 = vst [vmem:[%s1254_s11 + $0x70] sm:$0xff] %v649_v6  ;;  %666 = vst [vmem:[%s1254_s11 + $0x78] sm:$0xff] %v650_v21 }
 0x34b   : > { %930 = shalt.err (!%p927_p1)
}
 0x34c   : > { %s931_s7 = scalar_lea.hbm %s1281_s9, 2048  ;;  %s935_s8 = scalar_lea.hbm %s1338_s5, 8192 }
 0x34d   : > { %p932_p4 = scmp.ne.s32.totalorder %s1281_s9, %s931_s7  ;;  %p936_p6 = scmp.lt.s32.totalorder %s1281_s9, %s1338_s5 }
 0x34e   : > { %p937_p13 = scmp.lt.s32.totalorder %s935_s8, %s931_s7 }
 0x34f   : > { %p933_p11 = pnand %p932_p4, %p1354_p2 }
 0x350   : > { %p938_p3 = por %p937_p13, %p936_p6 }
 0x351   : > { %p934_p5 = pneg %p933_p11 }
 0x353   : > { %p939_p12 = pnand %p938_p3, %p934_p5 }
 0x355   : > { %942 = shalt.err (!%p939_p12)
}
 0x356   : > { %s993_s23 = smov 256   ;;  %s994_s28 = smov 16  }
 0x357   : > { %797 = dma.vmem_to_hbm [thread:$0]  (%p1354_p2), %s1283_s26, 2048, %s1281_s9, %s668_s22, %s993_s23, %s993_s23, %s994_s28  }
 0x358 PF: > { %p814_p0 = scmp.ge.s32.totalorder %s985_s21, 2  ;;  %s697_s14 = sand.u32 1, %s973_s18  }
 0x359   : > { %p1355_p7 = scmp.ne.s32.totalorder %s1346_s6, 0  ;;  %s698_s15 = scalar_lea.sflag [#allocation4], %s697_s14 }
 0x35b   : > { %p808_p8 = pnand %p814_p0, %p1355_p7 }
 0x35d   : > { %p809_p9 = pneg %p808_p8 }
 0x35f   : > { %968 = dma.done.wait (%p809_p9), %s698_s15, 2048  }
 0x360   : > { %970 = vsyncadd (%p809_p9), %s698_s15, 4294965248  ;;  %p19_p10 = scmp.ge.s32.totalorder %s1050_s24, 6   ;;  %s1356_s18 = smov %s977_s19 }
 0x361   : > { %s1357_s19 = smov %s981_s20  ;;  %s1358_s20 = smov %s1062_s27 }
 0x362   : > { %s1359_s21 = smov %s1050_s24  ;;  %21 = sbr.rel (!%p19_p10) target bundleno = 6 (0x6), region = 89 }
 0x367   :  { %703 = vsyncpa [#allocation3], 1 }
 0x368   :  { %705 = vsyncpa [#allocation3 + $0x1], 1 }
 0x369   :  { %706 = vsyncpa [#allocation6], 1 }
 0x36a   :  { %707 = vsyncpa [#allocation4], 1 }
 0x36b   :  { %709 = vsyncpa [#allocation4 + $0x1], 1 }

</bundles_post_ra>
